<compile_context>
chip_gen: v7x
topology: tpu7x:2x2x1
jax: 0.10.0
libtpu: 0.0.40
codegen_flags: <defaults>
</compile_context>

<pallas_src>
import jax
import jax.numpy as jnp
from jax.experimental import pallas as pl
from jax.experimental.pallas import tpu as pltpu

LANE = 128


def qnetwork_kernel(xT_ref, w1_ref, b1_ref, w2_ref, b2_ref, w3_ref, b3_ref, out_ref):
    # Activations are (features, batch_tile): batch on the lane axis.
    xT = xT_ref[...]                                                      # (S, TB)

    h1 = jnp.dot(w1_ref[...], xT, preferred_element_type=jnp.float32)    # (64, TB)
    h1 = jnp.maximum(h1 + b1_ref[...], 0.0)                              # (64,1) lane-broadcast

    h2 = jnp.dot(w2_ref[...], h1, preferred_element_type=jnp.float32)    # (16, TB)
    h2 = jnp.maximum(h2 + b2_ref[...], 0.0)

    out = jnp.dot(w3_ref[...], h2, preferred_element_type=jnp.float32)   # (A, TB)
    out_ref[...] = (out + b3_ref[...]).astype(out_ref.dtype)


def _round_up(n, m):
    return ((n + m - 1) // m) * m


def qnetwork_forward(x, params, *, block_b=512):
    """x: (B, state_size) f32. params: torch-native w{1,2,3}: (out,in), b{1,2,3}: (out,1)."""
    w1, b1 = params["w1"], params["b1"]
    w2, b2 = params["w2"], params["b2"]
    w3, b3 = params["w3"], params["b3"]
    B, S = x.shape
    A = w3.shape[0]

    # Lane-dense batch tile (multiple of 128), capped so double-buffered x/out
    # tiles + resident weights stay far under the scoped VMEM limit on all gens.
    tb = _round_up(min(block_b, _round_up(B, LANE)), LANE)
    padded_B = _round_up(B, tb)
    nb = padded_B // tb

    # (features, batch) layout with zero-padded batch tail.
    xT = jnp.zeros((S, padded_B), x.dtype).at[:, :B].set(x.T)

    full = lambda arr: pl.BlockSpec(arr.shape, lambda i: (0, 0))  # grid-invariant resident

    outT = pl.pallas_call(
        qnetwork_kernel,
        out_shape=jax.ShapeDtypeStruct((A, padded_B), jnp.float32),
        grid=(nb,),
        in_specs=[
            pl.BlockSpec((S, tb), lambda i: (0, i)),  # stream x tiles over batch
            full(w1), full(b1), full(w2), full(b2), full(w3), full(b3),
        ],
        out_specs=pl.BlockSpec((A, tb), lambda i: (0, i)),
        compiler_params=pltpu.CompilerParams(
            dimension_semantics=("parallel",),  # v7x: shard batch grid across the 2 TCs
        ),
    )(xT, w1, b1, w2, b2, w3, b3)

    return outT[:, :B].T  # back to (B, A), matching the PyTorch module


def init_params(key, state_size, action_size):
    """Deterministic init mimicking torch.nn.Linear (uniform +/- 1/sqrt(fan_in)).
    Weights are stored torch-native (out_features, in_features); biases (out, 1)."""
    ks = jax.random.split(key, 6)

    def linear(kw, kb, fan_in, fan_out):
        bound = 1.0 / jnp.sqrt(jnp.float32(fan_in))
        w = jax.random.uniform(kw, (fan_out, fan_in), jnp.float32, -bound, bound)
        b = jax.random.uniform(kb, (fan_out, 1), jnp.float32, -bound, bound)
        return w, b

    w1, b1 = linear(ks[0], ks[1], state_size, 64)
    w2, b2 = linear(ks[2], ks[3], 64, 16)
    w3, b3 = linear(ks[4], ks[5], 16, action_size)
    return {"w1": w1, "b1": b1, "w2": w2, "b2": b2, "w3": w3, "b3": b3}


def reference_forward(x, params):
    h = jnp.maximum(x @ params["w1"].T + params["b1"].T, 0.0)
    h = jnp.maximum(h @ params["w2"].T + params["b2"].T, 0.0)
    return h @ params["w3"].T + params["b3"].T


if __name__ == "__main__":
    key = jax.random.PRNGKey(0)
    k_params, k_x1, k_x2 = jax.random.split(key, 3)

    state_size, action_size = 8, 4
    params = init_params(k_params, state_size, action_size)

    # Small batch: single padded tile, grid=(1,).
    x_small = jax.random.normal(k_x1, (8, state_size), jnp.float32)
    out_small = qnetwork_forward(x_small, params)
    jax.block_until_ready(out_small)
    assert out_small.shape == (8, action_size)
    assert jnp.allclose(out_small, reference_forward(x_small, params), atol=1e-5, rtol=1e-5)

    # Larger non-multiple batch: exercises multi-step grid + padded tail.
    x_big = jax.random.normal(k_x2, (300, state_size), jnp.float32)
    out_big = qnetwork_forward(x_big, params, block_b=128)
    jax.block_until_ready(out_big)
    assert out_big.shape == (300, action_size)
    assert jnp.allclose(out_big, reference_forward(x_big, params), atol=1e-5, rtol=1e-5)

    print("KERNEL_OK")
</pallas_src>

<mosaic_0001>
module attributes {stable_mosaic.version = 11 : i64} {
  func.func @qnetwork_kernel(%arg0: i32, %arg1: memref<8x128xf32, #tpu.memory_space<vmem>>, %arg2: memref<64x8xf32, #tpu.memory_space<vmem>>, %arg3: memref<64x1xf32, #tpu.memory_space<vmem>>, %arg4: memref<16x64xf32, #tpu.memory_space<vmem>>, %arg5: memref<16x1xf32, #tpu.memory_space<vmem>>, %arg6: memref<4x16xf32, #tpu.memory_space<vmem>>, %arg7: memref<4x1xf32, #tpu.memory_space<vmem>>, %arg8: memref<4x128xf32, #tpu.memory_space<vmem>>) attributes {dimension_semantics = [#tpu.dimension_semantics<parallel>], iteration_bounds = array<i64: 1>, scalar_prefetch = 0 : i64, scratch_operands = 0 : i64, tpu.core_type = #tpu.core_type<tc>, window_params = [{transform_indices = @transform_0, window_bounds = array<i64: 8, 128>}, {pipeline_mode = #tpu.pipeline_mode<synchronous>, transform_indices = @transform_1, window_bounds = array<i64: 64, 8>}, {pipeline_mode = #tpu.pipeline_mode<synchronous>, transform_indices = @transform_2, window_bounds = array<i64: 64, 1>}, {pipeline_mode = #tpu.pipeline_mode<synchronous>, transform_indices = @transform_3, window_bounds = array<i64: 16, 64>}, {pipeline_mode = #tpu.pipeline_mode<synchronous>, transform_indices = @transform_4, window_bounds = array<i64: 16, 1>}, {pipeline_mode = #tpu.pipeline_mode<synchronous>, transform_indices = @transform_5, window_bounds = array<i64: 4, 16>}, {pipeline_mode = #tpu.pipeline_mode<synchronous>, transform_indices = @transform_6, window_bounds = array<i64: 4, 1>}, {transform_indices = @transform_7, window_bounds = array<i64: 4, 128>}]} {
    %c0 = arith.constant 0 : index
    %c0_0 = arith.constant 0 : index
    %0 = vector.load %arg1[%c0, %c0_0] : memref<8x128xf32, #tpu.memory_space<vmem>>, vector<8x128xf32>
    %c0_1 = arith.constant 0 : index
    %c0_2 = arith.constant 0 : index
    %1 = vector.load %arg2[%c0_1, %c0_2] : memref<64x8xf32, #tpu.memory_space<vmem>>, vector<64x8xf32>
    %cst = arith.constant dense<0.000000e+00> : vector<64x128xf32>
    %2 = tpu.matmul %1, %0, %cst {dimension_numbers = #tpu.dot_dimension_numbers<[1], [0], [0], [1], [0, 0, 1, 1], [], []>} : vector<64x8xf32>, vector<8x128xf32>, vector<64x128xf32> -> vector<64x128xf32>
    %c0_3 = arith.constant 0 : index
    %c0_4 = arith.constant 0 : index
    %3 = vector.load %arg3[%c0_3, %c0_4] : memref<64x1xf32, #tpu.memory_space<vmem>>, vector<64x1xf32>
    %4 = vector.broadcast %3 : vector<64x1xf32> to vector<64x128xf32>
    %5 = arith.addf %2, %4 : vector<64x128xf32>
    %cst_5 = arith.constant 0.000000e+00 : f32
    %6 = vector.broadcast %cst_5 : f32 to vector<64x128xf32>
    %7 = arith.maximumf %5, %6 : vector<64x128xf32>
    %c0_6 = arith.constant 0 : index
    %c0_7 = arith.constant 0 : index
    %8 = vector.load %arg4[%c0_6, %c0_7] : memref<16x64xf32, #tpu.memory_space<vmem>>, vector<16x64xf32>
    %cst_8 = arith.constant dense<0.000000e+00> : vector<16x128xf32>
    %9 = tpu.matmul %8, %7, %cst_8 {dimension_numbers = #tpu.dot_dimension_numbers<[1], [0], [0], [1], [0, 0, 1, 1], [], []>} : vector<16x64xf32>, vector<64x128xf32>, vector<16x128xf32> -> vector<16x128xf32>
    %c0_9 = arith.constant 0 : index
    %c0_10 = arith.constant 0 : index
    %10 = vector.load %arg5[%c0_9, %c0_10] : memref<16x1xf32, #tpu.memory_space<vmem>>, vector<16x1xf32>
    %11 = vector.broadcast %10 : vector<16x1xf32> to vector<16x128xf32>
    %12 = arith.addf %9, %11 : vector<16x128xf32>
    %cst_11 = arith.constant 0.000000e+00 : f32
    %13 = vector.broadcast %cst_11 : f32 to vector<16x128xf32>
    %14 = arith.maximumf %12, %13 : vector<16x128xf32>
    %c0_12 = arith.constant 0 : index
    %c0_13 = arith.constant 0 : index
    %15 = vector.load %arg6[%c0_12, %c0_13] : memref<4x16xf32, #tpu.memory_space<vmem>>, vector<4x16xf32>
    %cst_14 = arith.constant dense<0.000000e+00> : vector<4x128xf32>
    %16 = tpu.matmul %15, %14, %cst_14 {dimension_numbers = #tpu.dot_dimension_numbers<[1], [0], [0], [1], [0, 0, 1, 1], [], []>} : vector<4x16xf32>, vector<16x128xf32>, vector<4x128xf32> -> vector<4x128xf32>
    %c0_15 = arith.constant 0 : index
    %c0_16 = arith.constant 0 : index
    %17 = vector.load %arg7[%c0_15, %c0_16] : memref<4x1xf32, #tpu.memory_space<vmem>>, vector<4x1xf32>
    %18 = vector.broadcast %17 : vector<4x1xf32> to vector<4x128xf32>
    %19 = arith.addf %16, %18 : vector<4x128xf32>
    %c0_17 = arith.constant 0 : index
    %c0_18 = arith.constant 0 : index
    %20 = vector.load %arg8[%c0_17, %c0_18] : memref<4x128xf32, #tpu.memory_space<vmem>>, vector<4x128xf32>
    tpu.vector_store %arg8[%c0_17, %c0_18], %19 {strides = array<i32>} : memref<4x128xf32, #tpu.memory_space<vmem>>, vector<4x128xf32>,
    return
  }
  func.func @transform_0(%arg0: i32) -> (i32, i32) {
    %c0_i32 = arith.constant 0 : i32
    %c0_i32_0 = arith.constant 0 : i32
    return %c0_i32, %arg0 : i32, i32
  }
  func.func @transform_1(%arg0: i32) -> (i32, i32) {
    %c0_i32 = arith.constant 0 : i32
    %c0_i32_0 = arith.constant 0 : i32
    %c0_i32_1 = arith.constant 0 : i32
    return %c0_i32, %c0_i32_0 : i32, i32
  }
  func.func @transform_2(%arg0: i32) -> (i32, i32) {
    %c0_i32 = arith.constant 0 : i32
    %c0_i32_0 = arith.constant 0 : i32
    %c0_i32_1 = arith.constant 0 : i32
    return %c0_i32, %c0_i32_0 : i32, i32
  }
  func.func @transform_3(%arg0: i32) -> (i32, i32) {
    %c0_i32 = arith.constant 0 : i32
    %c0_i32_0 = arith.constant 0 : i32
    %c0_i32_1 = arith.constant 0 : i32
    return %c0_i32, %c0_i32_0 : i32, i32
  }
  func.func @transform_4(%arg0: i32) -> (i32, i32) {
    %c0_i32 = arith.constant 0 : i32
    %c0_i32_0 = arith.constant 0 : i32
    %c0_i32_1 = arith.constant 0 : i32
    return %c0_i32, %c0_i32_0 : i32, i32
  }
  func.func @transform_5(%arg0: i32) -> (i32, i32) {
    %c0_i32 = arith.constant 0 : i32
    %c0_i32_0 = arith.constant 0 : i32
    %c0_i32_1 = arith.constant 0 : i32
    return %c0_i32, %c0_i32_0 : i32, i32
  }
  func.func @transform_6(%arg0: i32) -> (i32, i32) {
    %c0_i32 = arith.constant 0 : i32
    %c0_i32_0 = arith.constant 0 : i32
    %c0_i32_1 = arith.constant 0 : i32
    return %c0_i32, %c0_i32_0 : i32, i32
  }
  func.func @transform_7(%arg0: i32) -> (i32, i32) {
    %c0_i32 = arith.constant 0 : i32
    %c0_i32_0 = arith.constant 0 : i32
    return %c0_i32, %arg0 : i32, i32
  }
}

</mosaic_0001>

<bundles_post_ra>
// kernel: tpu_custom_call.1
= control target key start
LH: loop header
LB: loop body
LE: loop exit
PB: predicated region body
PF: predicated region fallthrough
CT: control target
= control target key end

     0   :  { %vm84_vm0 = vcmask 64512   ;;  %v539_v4 = vmov 0   ;;  %s675_s0 = inlined_call_operand.vmem [shape: f32[8,128], index: 0, kind: input, shape index: {}]   ;;  %s676_s1 = inlined_call_operand.vmem [shape: f32[64,8], index: 1, kind: input, shape index: {}]   ;;  %s677_s2 = inlined_call_operand.vmem [shape: f32[64,1], index: 2, kind: input, shape index: {}]   ;;  %s678_s3 = inlined_call_operand.vmem [shape: f32[16,64], index: 3, kind: input, shape index: {}]   ;;  %s679_s4 = inlined_call_operand.vmem [shape: f32[16,1], index: 4, kind: input, shape index: {}]   ;;  %s680_s5 = inlined_call_operand.vmem [shape: f32[4,16], index: 5, kind: input, shape index: {}]   ;;  %s681_s6 = inlined_call_operand.vmem [shape: f32[4,1], index: 6, kind: input, shape index: {}]   ;;  %s682_s7 = inlined_call_operand.hbm [shape: f32[4,128], index: 7, kind: output, shape index: {}]  }
   0x1   :  { %v27_v0 = vld [vmem:[%s675_s0] sm:$0xff]  ;;  %v29_v2 = vld [vmem:[%s676_s1 + $0x8] sm:$0xff]  ;;  %v30_v3 = vld [vmem:[%s676_s1 + $0x10] sm:$0xff]  ;;  %513 = vset.pattern.permute.xlu0 %v539_v4  ;;  %514 = vset.pattern.permute.xlu1 %v539_v4 }
   0x2   :  { %v28_v1 = vld [vmem:[%s676_s1] sm:$0xff]  ;;  %449 = vmatprep.subr.mxu0 %v27_v0  ;;  %v38_v6 = vld [vmem:[%s677_s2 + $0x10] sm:$0xff]  ;;  %v31_v7 = vld [vmem:[%s676_s1 + $0x18] sm:$0xff] }
   0x3   :  { %451 = vmatprep.mubr.msk.f32.mxu0 %vm84_vm0, %v28_v1  ;;  %450 = vmatpush3.msra.mxu0 %v27_v0  ;;  %v36_v5 = vld [vmem:[%s677_s2] sm:$0xff]  ;;  %v37_v9 = vld [vmem:[%s677_s2 + $0x8] sm:$0xff]  ;;  %v39_v10 = vld [vmem:[%s677_s2 + $0x18] sm:$0xff] }
   0x4   :  { %452 = vmatmul.mubr.msk.f32.vlgmr.msra.gmra.mrb[0].mxu0 %vm84_vm0, %v29_v2  ;;  %46 = vperm.xlu0 %513, %v36_v5   ;;  %v32_v8 = vld [vmem:[%s676_s1 + $0x20] sm:$0xff] }
   0x5   :  { %454 = vmatprep.mubr.msk.f32.mxu0 %vm84_vm0, %v30_v3  ;;  %56 = vperm.xlu1 %514, %v38_v6  }
   0x6   :  { %12 = vsyncpa [#allocation3], 0  ;;  %v33_v11 = vld [vmem:[%s676_s1 + $0x28] sm:$0xff]  ;;  %v34_v12 = vld [vmem:[%s676_s1 + $0x30] sm:$0xff]  ;;  %vm236_vm1 = vcmask 523264   ;;  %v540_v59 = vmov 0.0|0.0  }
   0x7   :  { %v40_v13 = vld [vmem:[%s677_s2 + $0x20] sm:$0xff]  ;;  %v41_v14 = vld [vmem:[%s677_s2 + $0x28] sm:$0xff]  ;;  %v35_v15 = vld [vmem:[%s676_s1 + $0x38] sm:$0xff]  ;;  %505 = vmatprep.subr.bf16.mxu0 %v540_v59  ;;  %vm541_vm2 = vmmov 0   ;;  %v542_v60 = vmov 0.0   ;;  %vm327_vm3 = vcmask 130048  }
   0x8   :  { %455 = vmatmul.mubr.msk.f32.gmra.mrb[2].mxu0 %vm84_vm0, %v31_v7  ;;  %51 = vperm.xlu0 %513, %v37_v9   ;;  %v42_v16 = vld [vmem:[%s677_s2 + $0x30] sm:$0xff]  ;;  %v43_v17 = vld [vmem:[%s677_s2 + $0x38] sm:$0xff]  ;;  %v224_v18 = vld [vmem:[%s679_s4] sm:$0xff] }
   0x9   :  { %457 = vmatprep.mubr.msk.f32.mxu0 %vm84_vm0, %v32_v8  ;;  %61 = vperm.xlu1 %514, %v39_v10   ;;  %v225_v19 = vld [vmem:[%s679_s4 + $0x8] sm:$0xff]  ;;  %v321_v20 = vld [vmem:[%s681_s6] sm:$0xf] }
   0xa   :  { %v222_v21 = vld [vmem:[%s678_s3] sm:$0xff]  ;;  %v223_v58 = vld [vmem:[%s678_s3 + $0x8] sm:$0xff]  ;;  %s543_s3 = smov [#allocation2]  }
   0xb   :  { %479 = vmatprep.mubr.msk.f32.mxu1 %vm236_vm1, %v222_v21  ;;  %v320_v6 = vld [vmem:[%s680_s5] sm:$0xf]  ;;  %s408_s18 = sshll.u32 %s543_s3, 4  ;;  %s409_s18 = int_to_ptr.vmem [resolvable:$true] %s408_s18 }
   0xc   :  { %458 = vmatmul.mubr.msk.f32.gmra.mrb[4].mxu0 %vm84_vm0, %v33_v11  ;;  %66 = vperm.xlu0 %513, %v40_v13   ;;  %s515_s19 = scalar_lea.vmem %s409_s18, 64  ;;  %p520_p1 = scmp.lt.s32.totalorder %s409_s18, %s409_s18 }
   0xd   :  { %460 = vmatprep.mubr.msk.f32.mxu0 %vm84_vm0, %v34_v12  ;;  %71 = vperm.xlu1 %514, %v41_v14   ;;  %p516_p0 = scmp.ne.s32.totalorder %s409_s18, %s515_s19  ;;  %p521_p2 = scmp.lt.s32.totalorder %s515_s19, %s515_s19 }
   0xf   :  { %p522_p3 = por %p521_p2, %p520_p1 }
  0x10   :  { %461 = vmatmul.mubr.msk.f32.gmra.mrb[6].mxu0 %vm84_vm0, %v35_v15  ;;  %76 = vperm.xlu0 %513, %v42_v16  }
  0x11   :  { %81 = vperm.xlu1 %514, %v43_v17   ;;  %486 = vmatprep.mubr.msk.f32.mxu0 %vm541_vm2, %v542_v60  ;;  %p523_p4 = pnand %p522_p3, %p516_p0 }
  0x14   :  { %228 = vperm.xlu0 %513, %v224_v18  }
  0x15   :  { %233 = vperm.xlu1 %514, %v225_v19  }
  0x18   :  { %324 = vperm.xlu0 %513, %v321_v20  }
  0x83   :  { %v47_v22 = vpop.permute.xlu0 %46 }
  0x84   :  { %v57_v23 = vpop.permute.xlu1 %56 }
  0x87   :  { %v52_v24 = vpop.permute.xlu0 %51 }
  0x88   :  { %v62_v25 = vpop.permute.xlu1 %61 }
  0x8b   :  { %v67_v38 = vpop.permute.xlu0 %66 }
  0x8c   :  { %v72_v35 = vpop.permute.xlu1 %71 }
  0x8f   :  { %v77_v50 = vpop.permute.xlu0 %76 }
  0x90   :  { %v82_v47 = vpop.permute.xlu1 %81 }
  0x93   :  { %v229_v63 = vpop.permute.xlu0 %228 }
  0x94   :  { %v234_v61 = vpop.permute.xlu1 %233 }
  0x97   :  { %v325_v7 = vpop.permute.xlu0 %324 }
  0xd7   :  { %v453_v26 = vpop.f32.mrb[0].mxu0 }
  0xd8   :  { %v181_v27 = vadd.f32 %v453_v26, %v52_v24  ;;  %v175_v28 = vpop.f32.mrb[1].mxu0 }
  0xd9   :  { %v176_v29 = vadd.f32 %v175_v28, %v47_v22 }
  0xda   :  { %v215_v30 = vmax.f32 %v181_v27, 0.0 }
  0xdb   :  { %v214_v31 = vmax.f32 %v176_v29, 0.0  ;;  %v456_v32 = vpop.f32.mrb[2].mxu0 }
  0xdc   :  { %v191_v33 = vadd.f32 %v456_v32, %v62_v25  ;;  %v185_v34 = vpop.f32.mrb[3].mxu0 }
  0xdd   :  { %v186_v36 = vadd.f32 %v185_v34, %v57_v23  ;;  %v489_v37 = vpack.c.bf16 %v215_v30, %v214_v31 }
  0xde   :  { %v217_v39 = vmax.f32 %v191_v33, 0.0 }
  0xdf   :  { %v216_v40 = vmax.f32 %v186_v36, 0.0  ;;  %v459_v41 = vpop.f32.mrb[4].mxu0  ;;  %490 = vmatprep.subr.bf16.mxu1 %v489_v37 }
  0xe0   :  { %v201_v42 = vadd.f32 %v459_v41, %v72_v35  ;;  %v195_v43 = vpop.f32.mrb[5].mxu0  ;;  %492 = vmatpush3.bf16.msra.mxu1 %v489_v37 }
  0xe1   :  { %v493_v44 = vpack.c.bf16 %v217_v39, %v216_v40  ;;  %v196_v45 = vadd.f32 %v195_v43, %v67_v38 }
  0xe2   :  { %v219_v46 = vmax.f32 %v201_v42, 0.0 }
  0xe3   :  { %v218_v48 = vmax.f32 %v196_v45, 0.0  ;;  %v462_v49 = vpop.f32.mrb[6].mxu0  ;;  %494 = vmatprep.subr.bf16.mxu1 %v493_v44 }
  0xe4   :  { %v211_v51 = vadd.f32 %v462_v49, %v82_v47  ;;  %v205_v52 = vpop.f32.mrb[7].mxu0  ;;  %496 = vmatpush3.bf16.msra.mxu1 %v493_v44 }
  0xe5   :  { %v497_v53 = vpack.c.bf16 %v219_v46, %v218_v48  ;;  %v206_v54 = vadd.f32 %v205_v52, %v77_v50 }
  0xe6   :  { %v221_v55 = vmax.f32 %v211_v51, 0.0 }
  0xe7   :  { %v220_v56 = vmax.f32 %v206_v54, 0.0  ;;  %498 = vmatprep.subr.bf16.mxu1 %v497_v53 }
  0xe8   :  { %500 = vmatpush3.bf16.msra.mxu1 %v497_v53 }
  0xe9   :  { %v501_v57 = vpack.c.bf16 %v221_v55, %v220_v56 }
  0xeb   :  { %502 = vmatprep.subr.bf16.mxu1 %v501_v57 }
  0xec   :  { %504 = vmatpush3.bf16.msra.mxu1 %v501_v57 }
  0xef   :  { %480 = vmatmul.mubr.msk.f32.vlgmr.msra.gmra.mrb[0].mxu1 %vm236_vm1, %v223_v58 }
 0x1c2   :  { %v481_v62 = vpop.f32.mrb[0].mxu1 }
 0x1c3   :  { %v315_v0 = vadd.f32 %v481_v62, %v234_v61  ;;  %v309_v1 = vpop.f32.mrb[1].mxu1 }
 0x1c4   :  { %v310_v2 = vadd.f32 %v309_v1, %v229_v63 }
 0x1c5   :  { %v319_v3 = vmax.f32 %v315_v0, 0.0 }
 0x1c6   :  { %v318_v4 = vmax.f32 %v310_v2, 0.0 }
 0x1c8   :  { %v506_v5 = vpack.c.bf16 %v319_v3, %v318_v4 }
 0x1ca   :  { %507 = vmatpush3.bf16.msra.mxu0 %v506_v5 }
 0x1cd   :  { %487 = vmatmul.mubr.msk.f32.vlgmr.msra.gmra.mrb[8].mxu0 %vm327_vm3, %v320_v6 }
 0x2a0   :  { %v397_v8 = vpop.f32.mrb[8].mxu0 }
 0x2a1   :  { %v398_v9 = vadd.f32 %v397_v8, %v325_v7  ;;  %v488_v10 = vpop.f32.mrb[9].mxu0 }
 0x2a3   :  { %401 = vst [vmem:[#allocation2] sm:$0xf] %v398_v9 }
 0x2a4   :  { %526 = shalt.err (!%p523_p4)
}
 0x2a5   :  { %s527_s5 = scalar_lea.hbm %s682_s7, 64 }
 0x2a6   :  { %p528_p5 = scmp.ne.s32.totalorder %s682_s7, %s527_s5  ;;  %p531_p6 = scmp.lt.u32.totalorder %s527_s5, %s682_s7 }
 0x2a8   :  { %p533_p7 = pnand %p531_p6, %p528_p5 }
 0x2aa   :  { %536 = shalt.err (!%p533_p7)
}
 0x2ab   :  { %411 = dma.vmem_to_hbm [thread:$0]  %s409_s18, 64, %s682_s7, [#allocation3]  }
 0x2ac   :  { %537 = dma.done.wait [#allocation3], 64  }
 0x2ad   :  { %538 = vsyncadd [#allocation3], 4294967232 }
 0x2ae   :  { %415 = vsyncpa [#allocation3], 1 }

</bundles_post_ra>
